<compile_context>
chip_gen: v6e
topology: v6e:2x2x1
jax: 0.10.0
libtpu: 0.0.40
codegen_flags: <defaults>
</compile_context>

<pallas_src>
import math
import functools

import jax
import jax.numpy as jnp
from jax import lax
from jax.experimental import pallas as pl
from jax.experimental.pallas import tpu as pltpu


_MAX_TILE = 32768     # lanes per grid step (multiple of 128)


def _round_up(n, m):
    return ((n + m - 1) // m) * m


def _num_tensorcores():
    """2 on v7x (two TensorCores per chip), 1 on v5e / v6e / anything else."""
    try:
        kind = jax.devices()[0].device_kind.lower()
    except Exception:
        return 1
    return 2 if "v7" in kind else 1


def _hist_kernel(x_ref, y_ref, hist_ref, *, num_bins, vmin, vmax, sigma):
    """Accumulate the (num_bins, num_bins) joint KDE histogram over one P-tile."""
    k = pl.program_id(1)   # tile index within the core ("arbitrary" reduction axis)

    @pl.when(k == 0)
    def _():
        hist_ref[...] = jnp.zeros_like(hist_ref)

    # Fold 1/(sigma*sqrt(2)) into the inputs and the bin centers so the
    # per-element window is just exp(-(u - b)^2).  The Gaussian normalisation
    # constant cancels after the global renormalisation of p_joint.
    inv = 1.0 / (sigma * math.sqrt(2.0))
    step = (vmax - vmin) / max(num_bins - 1, 1)
    bin_idx = lax.broadcasted_iota(jnp.int32, (num_bins, 1), 0).astype(jnp.float32)
    bins_s = (vmin + bin_idx * step) * inv                      # (B, 1) constant

    x_s = x_ref[...] * inv                                      # (1, T)
    y_s = y_ref[...] * inv                                      # (1, T)

    dx = x_s - bins_s                                           # (B, T)
    win_x = jnp.exp(-(dx * dx)).astype(jnp.bfloat16)            # padded lanes -> exact 0
    dy = y_s - bins_s                                           # (B, T)
    win_y = jnp.exp(-(dy * dy)).astype(jnp.bfloat16)

    # hist[a, b] += sum_p win_x[a, p] * win_y[b, p]   (A @ B^T on the MXU).
    # Same contraction pattern as flash-attention Q.K^T — no materialised
    # transpose of win_y; accumulate in f32.
    hist_ref[...] += lax.dot_general(
        win_x, win_y,
        dimension_numbers=(((1,), (1,)), ((), ())),
        preferred_element_type=jnp.float32,
    )


def _mi_epilogue_kernel(hist_ref, out_ref, *, cores):
    """Combine per-core partial histograms and reduce to the MI scalar."""
    hist = hist_ref[0]
    for c in range(1, cores):
        hist = hist + hist_ref[c]                               # (B, B)

    hist_norm = jnp.sum(hist) + 1e-05
    p_joint = hist / hist_norm
    p_joint = p_joint / jnp.sum(p_joint)                        # global renorm

    p_x = jnp.sum(p_joint, axis=1, keepdims=True)               # (B, 1)
    p_y = jnp.sum(p_joint, axis=0, keepdims=True)               # (1, B)
    px_py = p_x * p_y                                           # outer(p_x, p_y)

    nzs = p_joint > 0.0
    p_safe = jnp.where(nzs, p_joint, 1.0)
    terms = jnp.where(nzs, p_joint * jnp.log(p_safe / (px_py + 1e-12)), 0.0)
    out_ref[0] = jnp.sum(terms)


class MILossGaussianPallas:
    """JAX/Pallas port of MILossGaussian (forward only)."""

    def __init__(self, vmin=0.0, vmax=1.0, num_bins=16, sample_ratio=1.0,
                 normalised=True, gt_val=None):
        self.vmin = float(vmin)
        self.vmax = float(vmax)
        self.num_bins = int(num_bins)
        self.sample_ratio = float(sample_ratio)
        self.normalised = normalised          # unused in the reference forward
        self.gt_val = gt_val
        bin_width = (vmax - vmin) / num_bins
        self.sigma = bin_width * (1.0 / (2.0 * math.sqrt(2.0 * math.log(2.0))))
        # kept only for the pure-JAX reference / inspection (not a kernel input)
        self.bins = jnp.linspace(self.vmin, self.vmax, self.num_bins,
                                 dtype=jnp.float32).reshape(self.num_bins, 1)

    def __call__(self, x, y):
        # TODO(synk): sample_ratio < 1.0 (torch.randperm subsampling) not
        # implemented; default sample_ratio == 1.0 is exact.
        assert x.shape[0] == 1 and x.shape[1] == 1, "reference forward requires N=1, C=1"

        x_flat = x.reshape(1, -1).astype(jnp.float32)            # (1, P)
        y_flat = y.reshape(1, -1).astype(jnp.float32)            # (1, P)
        p = x_flat.shape[-1]

        cores = _num_tensorcores()
        per_core = -(-p // cores)
        tile = min(_MAX_TILE, _round_up(per_core, 128))
        tiles_per_core = -(-p // (cores * tile))
        p_padded = cores * tiles_per_core * tile
        if p_padded != p:
            pad = p_padded - p
            # Sentinel pad for x: (sentinel - b) * inv >= 64/sqrt(2) for every
            # bin, so exp(-(dx)^2) underflows to exactly 0.0 (also 0.0 in bf16)
            # and padded lanes never reach the histogram.  y pads with 0.
            sentinel = self.vmax + 64.0 * self.sigma
            x_flat = jnp.pad(x_flat, ((0, 0), (0, pad)), constant_values=sentinel)
            y_flat = jnp.pad(y_flat, ((0, 0), (0, pad)))

        # Scoped-VMEM request sized from the real per-step working set:
        #   * 2 inputs x 2 pipeline buffers; a (1, tile) f32 block sublane-pads
        #     to (8, tile) in VMEM,
        #   * f32 window/diff temps + bf16 window slabs for both x and y.
        in_buf_bytes = 2 * 2 * 8 * tile * 4
        slab_f32 = self.num_bins * tile * 4
        slab_bf16 = self.num_bins * tile * 2
        work_bytes = 4 * slab_f32 + 2 * slab_bf16
        vmem_limit = int(min(max(in_buf_bytes + work_bytes + (4 << 20), 24 << 20),
                             48 << 20))

        hist_kernel = functools.partial(
            _hist_kernel, num_bins=self.num_bins, vmin=self.vmin, vmax=self.vmax,
            sigma=self.sigma)

        # TODO(synk): on v7x, verify via xprof that the leading "parallel" axis
        # actually shards across the two TensorCores; if not, switch it to
        # pltpu.CORE_PARALLEL.
        partial_hist = pl.pallas_call(
            hist_kernel,
            out_shape=jax.ShapeDtypeStruct(
                (cores, self.num_bins, self.num_bins), jnp.float32),
            grid_spec=pltpu.PrefetchScalarGridSpec(
                num_scalar_prefetch=0,
                grid=(cores, tiles_per_core),
                in_specs=[
                    pl.BlockSpec((1, tile),
                                 lambda i, k: (0, i * tiles_per_core + k)),
                    pl.BlockSpec((1, tile),
                                 lambda i, k: (0, i * tiles_per_core + k)),
                ],
                out_specs=pl.BlockSpec(
                    (None, self.num_bins, self.num_bins),
                    lambda i, k: (i, 0, 0)),
            ),
            compiler_params=pltpu.CompilerParams(
                dimension_semantics=("parallel", "arbitrary"),
                vmem_limit_bytes=vmem_limit),
        )(x_flat, y_flat)

        epilogue = functools.partial(_mi_epilogue_kernel, cores=cores)
        mi = pl.pallas_call(
            epilogue,
            out_shape=jax.ShapeDtypeStruct((1,), jnp.float32),
            in_specs=[pl.BlockSpec(memory_space=pltpu.MemorySpace.VMEM)],
            out_specs=pl.BlockSpec(memory_space=pltpu.MemorySpace.SMEM),
        )(partial_hist)[0]

        if self.gt_val:
            return (mi - self.gt_val) ** 2
        return mi


def _mi_reference(x, y, bins, sigma):
    """Pure-JAX reference mirroring the PyTorch forward (N=1)."""
    x = x.reshape(1, 1, -1).astype(jnp.float32)
    y = y.reshape(1, 1, -1).astype(jnp.float32)
    b = bins.reshape(-1, 1)
    win_x = jnp.exp(-(x - b) ** 2 / (2 * sigma ** 2)) / (math.sqrt(2 * math.pi) * sigma)
    win_y = jnp.exp(-(y - b) ** 2 / (2 * sigma ** 2)) / (math.sqrt(2 * math.pi) * sigma)
    hist_joint = jnp.einsum("nbp,ncp->nbc", win_x, win_y)
    hist_norm = hist_joint.reshape(hist_joint.shape[0], -1).sum(axis=1) + 1e-05
    p_joint = hist_joint / hist_norm.reshape(-1, 1, 1)
    p_joint = p_joint / p_joint.sum()
    p_x = p_joint.sum(axis=2).squeeze()
    p_y = p_joint.sum(axis=1).squeeze()
    px_py = jnp.outer(p_x, p_y)[None]
    nzs = p_joint > 0
    p_safe = jnp.where(nzs, p_joint, 1.0)
    return jnp.where(nzs, p_joint * jnp.log(p_safe / (px_py + 1e-12)), 0.0).sum()


if __name__ == "__main__":
    key = jax.random.PRNGKey(0)
    kx, ky = jax.random.split(key)

    loss_fn = MILossGaussianPallas(vmin=0.0, vmax=1.0, num_bins=16)

    # case 1: (N, 1, H, W) with P = 256 (exact tiling, no padding)
    x = jax.random.uniform(kx, (1, 1, 16, 16), dtype=jnp.float32)
    y = jax.random.uniform(ky, (1, 1, 16, 16), dtype=jnp.float32)
    mi = jax.block_until_ready(loss_fn(x, y))
    ref = _mi_reference(x, y, loss_fn.bins, loss_fn.sigma)
    assert bool(jnp.isfinite(mi)), mi
    # bf16 window slabs feed the MXU, so allow a slightly looser tolerance
    assert jnp.allclose(mi, ref, rtol=1e-2, atol=1e-3), (mi, ref)

    # case 2: P = 400 exercises the sentinel-padded remainder path
    kx2, ky2 = jax.random.split(ky)
    x2 = jax.random.uniform(kx2, (1, 1, 20, 20), dtype=jnp.float32)
    y2 = jax.random.uniform(ky2, (1, 1, 20, 20), dtype=jnp.float32)
    mi2 = jax.block_until_ready(loss_fn(x2, y2))
    ref2 = _mi_reference(x2, y2, loss_fn.bins, loss_fn.sigma)
    assert jnp.allclose(mi2, ref2, rtol=1e-2, atol=1e-3), (mi2, ref2)

    print("KERNEL_OK")
</pallas_src>

<mosaic_0001>
module attributes {stable_mosaic.version = 11 : i64} {
  func.func @_hist_kernel(%arg0: i32, %arg1: i32, %arg2: memref<1x256xf32, #tpu.memory_space<vmem>>, %arg3: memref<1x256xf32, #tpu.memory_space<vmem>>, %arg4: memref<1x16x16xf32, #tpu.memory_space<vmem>>) attributes {dimension_semantics = [#tpu.dimension_semantics<parallel>, #tpu.dimension_semantics<arbitrary>], iteration_bounds = array<i64: 1, 1>, scalar_prefetch = 0 : i64, scratch_operands = 0 : i64, tpu.core_type = #tpu.core_type<tc>, window_params = [{transform_indices = @transform_0, window_bounds = array<i64: 1, 256>}, {transform_indices = @transform_1, window_bounds = array<i64: 1, 256>}, {transform_indices = @transform_2, window_bounds = array<i64: 1, 16, 16>}]} {
    %c0_i32 = arith.constant 0 : i32
    %0 = arith.cmpi eq, %arg1, %c0_i32 : i32
    %1 = arith.extui %0 : i1 to i32
    %c0_i32_0 = arith.constant 0 : i32
    %2 = arith.cmpi ne, %1, %c0_i32_0 : i32
    scf.if %2 {
      %cst_17 = arith.constant 0.000000e+00 : f32
      %40 = vector.broadcast %cst_17 : f32 to vector<16x16xf32>
      %c0_18 = arith.constant 0 : index
      %c0_19 = arith.constant 0 : index
      %c0_20 = arith.constant 0 : index
      %41 = vector.load %arg4[%c0_18, %c0_19, %c0_20] : memref<1x16x16xf32, #tpu.memory_space<vmem>>, vector<1x16x16xf32>
      %42 = vector.shape_cast %41 : vector<1x16x16xf32> to vector<16x16xf32>
      %43 = vector.shape_cast %40 : vector<16x16xf32> to vector<1x16x16xf32>
      tpu.vector_store %arg4[%c0_18, %c0_19, %c0_20], %43 {strides = array<i32>} : memref<1x16x16xf32, #tpu.memory_space<vmem>>, vector<1x16x16xf32>,
    } else {
    }
    %3 = tpu.iota {dimensions = array<i32: 0>} : vector<16x1xi32>
    %4 = arith.sitofp %3 : vector<16x1xi32> to vector<16x1xf32>
    %cst = arith.constant 0.0666666701 : f32
    %5 = vector.broadcast %cst : f32 to vector<16x1xf32>
    %6 = arith.mulf %4, %5 : vector<16x1xf32>
    %cst_1 = arith.constant 0.000000e+00 : f32
    %7 = vector.broadcast %cst_1 : f32 to vector<16x1xf32>
    %8 = arith.addf %7, %6 : vector<16x1xf32>
    %cst_2 = arith.constant 26.6417484 : f32
    %9 = vector.broadcast %cst_2 : f32 to vector<16x1xf32>
    %10 = arith.mulf %8, %9 : vector<16x1xf32>
    %c0 = arith.constant 0 : index
    %c0_3 = arith.constant 0 : index
    %11 = vector.load %arg2[%c0, %c0_3] : memref<1x256xf32, #tpu.memory_space<vmem>>, vector<1x256xf32>
    %cst_4 = arith.constant 26.6417484 : f32
    %12 = vector.broadcast %cst_4 : f32 to vector<1x256xf32>
    %13 = arith.mulf %11, %12 : vector<1x256xf32>
    %c0_5 = arith.constant 0 : index
    %c0_6 = arith.constant 0 : index
    %14 = vector.load %arg3[%c0_5, %c0_6] : memref<1x256xf32, #tpu.memory_space<vmem>>, vector<1x256xf32>
    %cst_7 = arith.constant 26.6417484 : f32
    %15 = vector.broadcast %cst_7 : f32 to vector<1x256xf32>
    %16 = arith.mulf %14, %15 : vector<1x256xf32>
    %17 = vector.broadcast %13 : vector<1x256xf32> to vector<16x256xf32>
    %18 = vector.broadcast %10 : vector<16x1xf32> to vector<16x256xf32>
    %19 = arith.subf %17, %18 : vector<16x256xf32>
    %20 = arith.mulf %19, %19 : vector<16x256xf32>
    %cst_8 = arith.constant 0.000000e+00 : f32
    %21 = vector.broadcast %cst_8 : f32 to vector<16x256xf32>
    %22 = arith.subf %21, %20 : vector<16x256xf32>
    %23 = math.exp %22 : vector<16x256xf32>
    %24 = arith.truncf %23 : vector<16x256xf32> to vector<16x256xbf16>
    %25 = vector.broadcast %16 : vector<1x256xf32> to vector<16x256xf32>
    %26 = vector.broadcast %10 : vector<16x1xf32> to vector<16x256xf32>
    %27 = arith.subf %25, %26 : vector<16x256xf32>
    %28 = arith.mulf %27, %27 : vector<16x256xf32>
    %cst_9 = arith.constant 0.000000e+00 : f32
    %29 = vector.broadcast %cst_9 : f32 to vector<16x256xf32>
    %30 = arith.subf %29, %28 : vector<16x256xf32>
    %31 = math.exp %30 : vector<16x256xf32>
    %32 = arith.truncf %31 : vector<16x256xf32> to vector<16x256xbf16>
    %c0_10 = arith.constant 0 : index
    %c0_11 = arith.constant 0 : index
    %c0_12 = arith.constant 0 : index
    %33 = vector.load %arg4[%c0_10, %c0_11, %c0_12] : memref<1x16x16xf32, #tpu.memory_space<vmem>>, vector<1x16x16xf32>
    %34 = vector.shape_cast %33 : vector<1x16x16xf32> to vector<16x16xf32>
    %cst_13 = arith.constant dense<0.000000e+00> : vector<16x16xf32>
    %35 = tpu.matmul %24, %32, %cst_13 {dimension_numbers = #tpu.dot_dimension_numbers<[1], [1], [0], [0], [0, 0, 1, 0], [], []>} : vector<16x256xbf16>, vector<16x256xbf16>, vector<16x16xf32> -> vector<16x16xf32>
    %36 = arith.addf %34, %35 : vector<16x16xf32>
    %c0_14 = arith.constant 0 : index
    %c0_15 = arith.constant 0 : index
    %c0_16 = arith.constant 0 : index
    %37 = vector.load %arg4[%c0_14, %c0_15, %c0_16] : memref<1x16x16xf32, #tpu.memory_space<vmem>>, vector<1x16x16xf32>
    %38 = vector.shape_cast %37 : vector<1x16x16xf32> to vector<16x16xf32>
    %39 = vector.shape_cast %36 : vector<16x16xf32> to vector<1x16x16xf32>
    tpu.vector_store %arg4[%c0_14, %c0_15, %c0_16], %39 {strides = array<i32>} : memref<1x16x16xf32, #tpu.memory_space<vmem>>, vector<1x16x16xf32>,
    return
  }
  func.func @transform_0(%arg0: i32, %arg1: i32) -> (i32, i32) {
    %c1_i32 = arith.constant 1 : i32
    %0 = arith.muli %arg0, %c1_i32 : i32
    %1 = arith.addi %0, %arg1 : i32
    %c0_i32 = arith.constant 0 : i32
    %c0_i32_0 = arith.constant 0 : i32
    return %c0_i32, %1 : i32, i32
  }
  func.func @transform_1(%arg0: i32, %arg1: i32) -> (i32, i32) {
    %c1_i32 = arith.constant 1 : i32
    %0 = arith.muli %arg0, %c1_i32 : i32
    %1 = arith.addi %0, %arg1 : i32
    %c0_i32 = arith.constant 0 : i32
    %c0_i32_0 = arith.constant 0 : i32
    return %c0_i32, %1 : i32, i32
  }
  func.func @transform_2(%arg0: i32, %arg1: i32) -> (i32, i32, i32) {
    %c0_i32 = arith.constant 0 : i32
    %c0_i32_0 = arith.constant 0 : i32
    %c0_i32_1 = arith.constant 0 : i32
    return %arg0, %c0_i32, %c0_i32_0 : i32, i32, i32
  }
}

</mosaic_0001>

<bundles_post_ra>
// kernel: tpu_custom_call.1
= control target key start
LH: loop header
LB: loop body
LE: loop exit
PB: predicated region body
PF: predicated region fallthrough
CT: control target
= control target key end

     0   :  { %7 = vsyncpa [#allocation3], 0  ;;  %s325_s0 = inlined_call_operand.hbm [shape: f32[1,256], index: 0, kind: input, shape index: {}]   ;;  %s326_s1 = inlined_call_operand.hbm [shape: f32[1,256], index: 1, kind: input, shape index: {}]   ;;  %s327_s2 = inlined_call_operand.hbm [shape: f32[1,16,16], index: 2, kind: output, shape index: {}]  }
   0x1   :  { %8 = vsyncpa [#allocation6], 0 }
   0x2   :  { %9 = vsyncpa [#allocation4], 0  ;;  %s291_s9 = smov [#allocation2]   ;;  %s292_s11 = smov [#allocation5]  }
   0x3   :  { %s20_s10 = sshll.u32 %s291_s9, 4  ;;  %s34_s12 = sshll.u32 %s292_s11, 4  ;;  %s21_s10 = int_to_ptr.vmem [resolvable:$true] %s20_s10  ;;  %s35_s12 = int_to_ptr.vmem [resolvable:$true] %s34_s12 }
   0x4   :  { %s233_s13 = scalar_lea.vmem %s21_s10, 32  ;;  %p238_p1 = scmp.lt.s32.totalorder %s21_s10, %s21_s10 }
   0x5   :  { %p234_p0 = scmp.ne.s32.totalorder %s21_s10, %s233_s13  ;;  %p239_p2 = scmp.lt.s32.totalorder %s233_s13, %s233_s13 }
   0x7   :  { %p240_p3 = por %p239_p2, %p238_p1 }
   0x9   :  { %p241_p4 = pnand %p240_p3, %p234_p0 }
   0xb   :  { %244 = shalt.err (!%p241_p4)
}
   0xc   :  { %23 = dma.hbm_to_vmem [thread:$0]  %s325_s0, 32, %s21_s10, [#allocation3]  }
   0xd   :  { %s253_s16 = scalar_lea.vmem %s35_s12, 32  ;;  %p258_p6 = scmp.lt.s32.totalorder %s35_s12, %s35_s12 }
   0xe   :  { %p254_p5 = scmp.ne.s32.totalorder %s35_s12, %s253_s16  ;;  %p259_p7 = scmp.lt.s32.totalorder %s253_s16, %s253_s16 }
  0x10   :  { %p260_p8 = por %p259_p7, %p258_p6 }
  0x12   :  { %p261_p9 = pnand %p260_p8, %p254_p5 }
  0x14   :  { %264 = shalt.err (!%p261_p9)
}
  0x15   :  { %37 = dma.hbm_to_vmem [thread:$0]  %s326_s1, 32, %s35_s12, [#allocation6]  }
  0x16   :  { %285 = dma.done.wait [#allocation3], 32  }
  0x17   :  { %286 = vsyncadd [#allocation3], 4294967264 }
  0x18   :  { %287 = dma.done.wait [#allocation6], 32  }
  0x19   :  { %288 = vsyncadd [#allocation6], 4294967264  ;;  %v56_v0 = vlaneseq  ;;  %vm53_vm0 = vcmask 130048   ;;  %v293_v1 = vmov 0.0   ;;  %v69_v9 = vld [vmem:[#allocation5] sm:$0x3] }
  0x1a   :  { %54 = vst.msk [vmem:[#allocation7] sm:$0xff] %vm53_vm0, %v293_v1  ;;  %55 = vst.msk [vmem:[#allocation7 + $0x8] sm:$0xff] %vm53_vm0, %v293_v1  ;;  %v67_v10 = vld [vmem:[#allocation2] sm:$0x3]  ;;  %v70_v13 = vmul.f32 26.641748, %v69_v9 }
  0x1b   :  { %v57_v2 = vshrl.u32 %v56_v0, 7  ;;  %v68_v14 = vmul.f32 26.641748, %v67_v10  ;;  %s294_s0 = smov [#allocation7]  }
  0x1c   :  { %s190_s1 = sshll.u32 %s294_s0, 4  ;;  %s191_s1 = int_to_ptr.vmem [resolvable:$true] %s190_s1 }
  0x1d   :  { %v58_v3 = vadd.s32 8, %v57_v2  ;;  %v59_v4 = vcvt.s32.f32 %v57_v2  ;;  %v78_v7 = vsub.s32 1, %v57_v2  ;;  %v74_v8 = vsub.s32 0, %v57_v2  ;;  %s265_s19 = scalar_lea.vmem %s191_s1, 256  ;;  %p270_p11 = scmp.lt.s32.totalorder %s191_s1, %s191_s1 }
  0x1e   :  { %p266_p10 = scmp.ne.s32.totalorder %s191_s1, %s265_s19  ;;  %p271_p12 = scmp.lt.s32.totalorder %s265_s19, %s265_s19 }
  0x1f   :  { %v60_v5 = vcvt.s32.f32 %v58_v3  ;;  %v61_v6 = vmul.f32 0.06666667, %v59_v4  ;;  %v112_v16 = vrot.slane %v70_v13, %v78_v7  ;;  %v108_v17 = vrot.slane %v70_v13, %v74_v8 }
  0x20   :  { %v79_v18 = vrot.slane %v68_v14, %v78_v7  ;;  %v75_v19 = vrot.slane %v68_v14, %v74_v8  ;;  %p272_p13 = por %p271_p12, %p270_p11 }
  0x21   :  { %v62_v11 = vmul.f32 0.06666667, %v60_v5  ;;  %v65_v12 = vmul.f32 26.641748, %v61_v6  ;;  %v137_v0 = vld [vmem:[#allocation7] sm:$0xff]  ;;  %v138_v4 = vld [vmem:[#allocation7 + $0x8] sm:$0xff] }
  0x22   :  { %p273_p0 = pnand %p272_p13, %p266_p10 }
  0x23   :  { %v66_v15 = vmul.f32 26.641748, %v62_v11  ;;  %v116_v20 = vsub.f32 %v112_v16, %v65_v12  ;;  %v115_v22 = vsub.f32 %v108_v17, %v65_v12  ;;  %v83_v24 = vsub.f32 %v79_v18, %v65_v12 }
  0x24   :  { %v82_v26 = vsub.f32 %v75_v19, %v65_v12 }
  0x25   :  { %v118_v21 = vsub.f32 %v112_v16, %v66_v15  ;;  %v117_v23 = vsub.f32 %v108_v17, %v66_v15  ;;  %v85_v25 = vsub.f32 %v79_v18, %v66_v15  ;;  %v84_v27 = vsub.f32 %v75_v19, %v66_v15 }
  0x26   :  { %v120_v28 = vmul.f32 %v116_v20, %v116_v20  ;;  %v119_v30 = vmul.f32 %v115_v22, %v115_v22  ;;  %v87_v32 = vmul.f32 %v83_v24, %v83_v24  ;;  %v86_v34 = vmul.f32 %v82_v26, %v82_v26 }
  0x27   :  { %v122_v29 = vmul.f32 %v118_v21, %v118_v21  ;;  %v121_v31 = vmul.f32 %v117_v23, %v117_v23  ;;  %v89_v33 = vmul.f32 %v85_v25, %v85_v25  ;;  %v88_v35 = vmul.f32 %v84_v27, %v84_v27 }
  0x28   :  { %v124_v36 = vsub.f32 0.0, %v120_v28  ;;  %v123_v38 = vsub.f32 0.0, %v119_v30  ;;  %v91_v40 = vsub.f32 0.0, %v87_v32  ;;  %v90_v42 = vsub.f32 0.0, %v86_v34 }
  0x29   :  { %v126_v37 = vsub.f32 0.0, %v122_v29  ;;  %v125_v39 = vsub.f32 0.0, %v121_v31  ;;  %v93_v41 = vsub.f32 0.0, %v89_v33  ;;  %v92_v47 = vsub.f32 0.0, %v88_v35 }
  0x2a   :  { %v129_v43 = vmul.f32 1.442695, %v124_v36  ;;  %v127_v45 = vmul.f32 1.442695, %v123_v38  ;;  %v96_v48 = vmul.f32 1.442695, %v91_v40 }
  0x2b   :  { %v133_v44 = vmul.f32 1.442695, %v126_v37  ;;  %v131_v46 = vmul.f32 1.442695, %v125_v39  ;;  %v100_v49 = vmul.f32 1.442695, %v93_v41 }
  0x2c   :  { %209 = vpow2.f32 %v129_v43  ;;  %v94_v50 = vmul.f32 1.442695, %v90_v42  ;;  %v98_v51 = vmul.f32 1.442695, %v92_v47 }
  0x2d   :  { %211 = vpow2.f32 %v133_v44 }
  0x2e   :  { %213 = vpow2.f32 %v127_v45 }
  0x2f   :  { %215 = vpow2.f32 %v131_v46 }
  0x30   :  { %217 = vpow2.f32 %v96_v48 }
  0x31   :  { %219 = vpow2.f32 %v100_v49 }
  0x32   :  { %221 = vpow2.f32 %v94_v50 }
  0x33   :  { %223 = vpow2.f32 %v98_v51 }
  0x39   :  { %v210_v52 = vpop.eup %209 }
  0x3a   :  { %v212_v53 = vpop.eup %211 }
  0x3b   :  { %v214_v54 = vpop.eup %213  ;;  %v136_v55 = vpack.c.bf16 %v212_v53, %v210_v52 }
  0x3c   :  { %v216_v56 = vpop.eup %215 }
  0x3d   :  { %v218_v57 = vpop.eup %217  ;;  %153 = vmatprep.subr.bf16.mxu0 %v136_v55  ;;  %v135_v58 = vpack.c.bf16 %v216_v56, %v214_v54 }
  0x3e   :  { %v220_v59 = vpop.eup %219 }
  0x3f   :  { %v222_v60 = vpop.eup %221  ;;  %154 = vmatpush1.bf16.xpose.msra.mxu0 %v135_v58  ;;  %v103_v61 = vpack.c.bf16 %v220_v59, %v218_v57 }
  0x40   :  { %v224_v62 = vpop.eup %223 }
  0x41   :  { %171 = vmatprep.mubr.bf16.mxu0 %v103_v61  ;;  %v102_v63 = vpack.c.bf16 %v224_v62, %v222_v60 }
  0x46   :  { %172 = vmatmul.mubr.bf16.vlgmr.msra.gmra.mxu0 %v102_v63 }
 0x106   :  { %v173_v1 = vpop.f32.mrf.mxu0 }
 0x107   :  { %v180_v2 = vadd.f32 %v173_v1, %v137_v0 }
 0x108   :  { %v175_v3 = vpop.f32.mrf.mxu0 }
 0x109   :  { %183 = vst.msk [vmem:[#allocation7] sm:$0xff] %vm53_vm0, %v180_v2 }
 0x10a   :  { %v176_v5 = vpop.f32.mrf.mxu0 }
 0x10b   :  { %v181_v6 = vadd.f32 %v176_v5, %v138_v4 }
 0x10c   :  { %v178_v7 = vpop.f32.mrf.mxu0 }
 0x10d   :  { %184 = vst.msk [vmem:[#allocation7 + $0x8] sm:$0xff] %vm53_vm0, %v181_v6 }
 0x10e   :  { %276 = shalt.err (!%p273_p0)
}
 0x10f   :  { %s295_s20 = smov 128   ;;  %s296_s21 = smov 8  }
 0x110   :  { %196 = dma.vmem_to_hbm [thread:$0]  %s191_s1, 256, %s327_s2, [#allocation4], %s295_s20, %s295_s20, %s296_s21  }
 0x111   :  { %289 = dma.done.wait [#allocation4], 256  }
 0x112   :  { %290 = vsyncadd [#allocation4], 4294967040 }
 0x113   :  { %200 = vsyncpa [#allocation3], 1 }
 0x114   :  { %201 = vsyncpa [#allocation6], 1 }
 0x115   :  { %202 = vsyncpa [#allocation4], 1 }

</bundles_post_ra>
